<compile_context>
chip_gen: v7x
topology: tpu7x:2x2x1
jax: 0.10.0
libtpu: 0.0.40
codegen_flags: <defaults>
</compile_context>

<pallas_src>
import jax
import jax.numpy as jnp
from jax.experimental import pallas as pl
from jax.experimental.pallas import tpu as pltpu


def _choose_rows_per_step(B, F, itemsize):
    """Pick R (rows per grid step) so one (R, F) block stays ~<= 4 MiB."""
    budget = 4 * 1024 * 1024
    r = budget // max(1, F * itemsize)
    r = max(8, min(int(r), 512))
    r = (r // 8) * 8  # keep the sublane dim a multiple of 8 when tiling B
    if B <= r:
        return B  # single grid step; block == full batch dim (always legal)
    return r


def my_loss(output_matrix, destination, label=None):
    """output_matrix: (B, ...) float array; destination: (B,) int array."""
    del label  # unused by the reference module (lb = 1 always)

    B = output_matrix.shape[0]
    F = 1
    for d in output_matrix.shape[1:]:
        F *= d

    x = output_matrix.reshape(B, F)                    # native dtype, no pad
    dest = destination.astype(jnp.int32).reshape(B, 1)

    R = _choose_rows_per_step(B, F, x.dtype.itemsize)
    n_steps = pl.cdiv(B, R)
    inv_b = 1.0 / float(B)  # static scale applied in the epilogue

    def _loss_kernel(dest_ref, x_ref, out_ref):
        i = pl.program_id(0)
        n = pl.num_programs(0)  # Python int (static grid)

        @pl.when(i == 0)
        def _():
            out_ref[...] = jnp.zeros_like(out_ref)

        xb = x_ref[...].astype(jnp.float32)   # (R, F), in-kernel cast
        d = dest_ref[...]                     # (R, 1) int32 targets
        r, f = xb.shape

        # One-hot select of element destination[row] in each row, plus a row
        # validity mask for the (possibly ragged) last block.
        col = jax.lax.broadcasted_iota(jnp.int32, (r, f), 1)
        row = jax.lax.broadcasted_iota(jnp.int32, (r, 1), 0)
        valid = (i * r + row) < B
        sel = (col == d) & valid

        # Clamp then squared error against label 1; non-selected lanes -> 0.
        xc = jnp.clip(xb, 1e-5, 0.99999)
        err = jnp.where(sel, (xc - 1.0) ** 2, 0.0)

        out_ref[...] += jnp.sum(err)

        @pl.when(i == n - 1)
        def _():
            out_ref[...] = out_ref[...] * inv_b

    out = pl.pallas_call(
        _loss_kernel,
        out_shape=jax.ShapeDtypeStruct((1, 1), jnp.float32),
        grid_spec=pltpu.PrefetchScalarGridSpec(
            num_scalar_prefetch=0,
            grid=(n_steps,),
            in_specs=[
                pl.BlockSpec((R, 1), lambda i: (i, 0)),   # destination block
                pl.BlockSpec((R, F), lambda i: (i, 0)),   # whole-row x block
            ],
            out_specs=pl.BlockSpec((1, 1), lambda i: (0, 0)),
        ),
        compiler_params=pltpu.CompilerParams(
            dimension_semantics=("arbitrary",),  # resident accumulator output
        ),
    )(dest, x)
    return out[0, 0]


if __name__ == "__main__":
    key = jax.random.PRNGKey(0)
    k1, k2 = jax.random.split(key)

    B, C, H, W = 2, 4, 16, 16
    output_matrix = jax.random.uniform(
        k1, (B, C, H, W), dtype=jnp.float32, minval=-0.5, maxval=1.5
    )
    destination = jax.random.randint(k2, (B,), 0, C * H * W, dtype=jnp.int32)
    label = jnp.ones((B,), dtype=jnp.int32)  # unused, mirrors torch signature

    loss = my_loss(output_matrix, destination, label)
    jax.block_until_ready(loss)

    # Pure-JAX reference check
    xc = jnp.clip(output_matrix.reshape(B, -1), 1e-5, 0.99999)
    picked = xc[jnp.arange(B), destination]
    ref = jnp.mean((picked - 1.0) ** 2)
    assert jnp.allclose(loss, ref, rtol=1e-6, atol=1e-6), (loss, ref)

    print("KERNEL_OK")
</pallas_src>

<mosaic_0001>
module attributes {stable_mosaic.version = 11 : i64} {
  func.func @_loss_kernel(%arg0: i32, %arg1: memref<2x1xi32, #tpu.memory_space<vmem>>, %arg2: memref<2x1024xf32, #tpu.memory_space<vmem>>, %arg3: memref<1x1xf32, #tpu.memory_space<vmem>>) attributes {dimension_semantics = [#tpu.dimension_semantics<arbitrary>], iteration_bounds = array<i64: 1>, scalar_prefetch = 0 : i64, scratch_operands = 0 : i64, tpu.core_type = #tpu.core_type<tc>, window_params = [{transform_indices = @transform_0, window_bounds = array<i64: 2, 1>}, {transform_indices = @transform_1, window_bounds = array<i64: 2, 1024>}, {pipeline_mode = #tpu.pipeline_mode<synchronous>, transform_indices = @transform_2, window_bounds = array<i64: 1, 1>}]} {
    %c0_i32 = arith.constant 0 : i32
    %0 = arith.cmpi eq, %arg0, %c0_i32 : i32
    %1 = arith.extui %0 : i1 to i32
    %c0_i32_0 = arith.constant 0 : i32
    %2 = arith.cmpi ne, %1, %c0_i32_0 : i32
    scf.if %2 {
      %cst_15 = arith.constant 0.000000e+00 : f32
      %36 = vector.broadcast %cst_15 : f32 to vector<1x1xf32>
      %c0_16 = arith.constant 0 : index
      %c0_17 = arith.constant 0 : index
      %37 = vector.load %arg3[%c0_16, %c0_17] : memref<1x1xf32, #tpu.memory_space<vmem>>, vector<1x1xf32>
      tpu.vector_store %arg3[%c0_16, %c0_17], %36 {strides = array<i32>} : memref<1x1xf32, #tpu.memory_space<vmem>>, vector<1x1xf32>,
    } else {
    }
    %c0 = arith.constant 0 : index
    %c0_1 = arith.constant 0 : index
    %3 = vector.load %arg2[%c0, %c0_1] : memref<2x1024xf32, #tpu.memory_space<vmem>>, vector<2x1024xf32>
    %c0_2 = arith.constant 0 : index
    %c0_3 = arith.constant 0 : index
    %4 = vector.load %arg1[%c0_2, %c0_3] : memref<2x1xi32, #tpu.memory_space<vmem>>, vector<2x1xi32>
    %5 = tpu.iota {dimensions = array<i32: 1>} : vector<2x1024xi32>
    %6 = tpu.iota {dimensions = array<i32: 0>} : vector<2x1xi32>
    %c2_i32 = arith.constant 2 : i32
    %7 = arith.muli %arg0, %c2_i32 : i32
    %8 = vector.broadcast %7 : i32 to vector<2x1xi32>
    %9 = arith.addi %8, %6 : vector<2x1xi32>
    %c2_i32_4 = arith.constant 2 : i32
    %10 = vector.broadcast %c2_i32_4 : i32 to vector<2x1xi32>
    %11 = arith.cmpi slt, %9, %10 : vector<2x1xi32>
    %12 = vector.broadcast %4 : vector<2x1xi32> to vector<2x1024xi32>
    %13 = arith.cmpi eq, %5, %12 : vector<2x1024xi32>
    %14 = vector.broadcast %11 : vector<2x1xi1> to vector<2x1024xi1>
    %15 = arith.andi %13, %14 : vector<2x1024xi1>
    %cst = arith.constant 9.99999974E-6 : f32
    %cst_5 = arith.constant 0.999989986 : f32
    %16 = vector.broadcast %cst : f32 to vector<2x1024xf32>
    %17 = arith.maximumf %16, %3 : vector<2x1024xf32>
    %18 = vector.broadcast %cst_5 : f32 to vector<2x1024xf32>
    %19 = arith.minimumf %18, %17 : vector<2x1024xf32>
    %cst_6 = arith.constant 1.000000e+00 : f32
    %20 = vector.broadcast %cst_6 : f32 to vector<2x1024xf32>
    %21 = arith.subf %19, %20 : vector<2x1024xf32>
    %22 = arith.mulf %21, %21 : vector<2x1024xf32>
    %cst_7 = arith.constant 0.000000e+00 : f32
    %23 = vector.broadcast %cst_7 : f32 to vector<2x1024xf32>
    %24 = arith.select %15, %22, %23 : vector<2x1024xi1>, vector<2x1024xf32>
    %c0_8 = arith.constant 0 : index
    %c0_9 = arith.constant 0 : index
    %25 = vector.load %arg3[%c0_8, %c0_9] : memref<1x1xf32, #tpu.memory_space<vmem>>, vector<1x1xf32>
    %26 = vector.shape_cast %24 : vector<2x1024xf32> to vector<1x2x1024xf32>
    %cst_10 = arith.constant dense<0.000000e+00> : vector<1xf32>
    %27 = vector.multi_reduction <add>, %26, %cst_10 [1, 2] : vector<1x2x1024xf32> to vector<1xf32>
    %28 = vector.shape_cast %27 : vector<1xf32> to vector<1x1x1xf32>
    %29 = vector.extract %28[0, 0, 0] : f32 from vector<1x1x1xf32>
    %30 = vector.broadcast %29 : f32 to vector<1x1xf32>
    %31 = arith.addf %25, %30 : vector<1x1xf32>
    %c0_11 = arith.constant 0 : index
    %c0_12 = arith.constant 0 : index
    %32 = vector.load %arg3[%c0_11, %c0_12] : memref<1x1xf32, #tpu.memory_space<vmem>>, vector<1x1xf32>
    tpu.vector_store %arg3[%c0_11, %c0_12], %31 {strides = array<i32>} : memref<1x1xf32, #tpu.memory_space<vmem>>, vector<1x1xf32>,
    %c0_i32_13 = arith.constant 0 : i32
    %33 = arith.cmpi eq, %arg0, %c0_i32_13 : i32
    %34 = arith.extui %33 : i1 to i32
    %c0_i32_14 = arith.constant 0 : i32
    %35 = arith.cmpi ne, %34, %c0_i32_14 : i32
    scf.if %35 {
      %c0_15 = arith.constant 0 : index
      %c0_16 = arith.constant 0 : index
      %36 = vector.load %arg3[%c0_15, %c0_16] : memref<1x1xf32, #tpu.memory_space<vmem>>, vector<1x1xf32>
      %cst_17 = arith.constant 5.000000e-01 : f32
      %37 = vector.broadcast %cst_17 : f32 to vector<1x1xf32>
      %38 = arith.mulf %36, %37 : vector<1x1xf32>
      %c0_18 = arith.constant 0 : index
      %c0_19 = arith.constant 0 : index
      %39 = vector.load %arg3[%c0_18, %c0_19] : memref<1x1xf32, #tpu.memory_space<vmem>>, vector<1x1xf32>
      tpu.vector_store %arg3[%c0_18, %c0_19], %38 {strides = array<i32>} : memref<1x1xf32, #tpu.memory_space<vmem>>, vector<1x1xf32>,
    } else {
    }
    return
  }
  func.func @transform_0(%arg0: i32) -> (i32, i32) {
    %c0_i32 = arith.constant 0 : i32
    %c0_i32_0 = arith.constant 0 : i32
    return %arg0, %c0_i32 : i32, i32
  }
  func.func @transform_1(%arg0: i32) -> (i32, i32) {
    %c0_i32 = arith.constant 0 : i32
    %c0_i32_0 = arith.constant 0 : i32
    return %arg0, %c0_i32 : i32, i32
  }
  func.func @transform_2(%arg0: i32) -> (i32, i32) {
    %c0_i32 = arith.constant 0 : i32
    %c0_i32_0 = arith.constant 0 : i32
    %c0_i32_1 = arith.constant 0 : i32
    return %c0_i32, %c0_i32_0 : i32, i32
  }
}

</mosaic_0001>

<bundles_post_ra>
// kernel: tpu_custom_call.1
= control target key start
LH: loop header
LB: loop body
LE: loop exit
PB: predicated region body
PF: predicated region fallthrough
CT: control target
= control target key end

     0   :  { %7 = vsyncpa [#allocation3], 0  ;;  %s310_s0 = inlined_call_operand.vmem [shape: s32[2,1], index: 0, kind: input, shape index: {}]   ;;  %s311_s1 = inlined_call_operand.hbm [shape: f32[2,1024], index: 1, kind: input, shape index: {}]   ;;  %s312_s2 = inlined_call_operand.hbm [shape: f32[1,1], index: 2, kind: output, shape index: {}]  }
   0x1   :  { %8 = vsyncpa [#allocation4], 0  ;;  %s238_s9 = smov [#allocation2]   ;;  %s190_s13 = scalar_lea.hbm %s311_s1, 256 }
   0x2   :  { %s17_s10 = sshll.u32 %s238_s9, 4  ;;  %p191_p0 = scmp.ne.s32.totalorder %s311_s1, %s190_s13  ;;  %s18_s10 = int_to_ptr.vmem [resolvable:$true] %s17_s10 }
   0x3   :  { %p194_p1 = scmp.lt.u32.totalorder %s190_s13, %s311_s1 }
   0x5   :  { %p196_p2 = pnand %p194_p1, %p191_p0 }
   0x7   :  { %199 = shalt.err (!%p196_p2)
}
   0x8   :  { %s200_s18 = scalar_lea.vmem %s18_s10, 256  ;;  %p205_p4 = scmp.lt.s32.totalorder %s18_s10, %s18_s10 }
   0x9   :  { %p201_p3 = scmp.ne.s32.totalorder %s18_s10, %s200_s18  ;;  %p206_p5 = scmp.lt.s32.totalorder %s200_s18, %s200_s18 }
   0xb   :  { %p207_p6 = por %p206_p5, %p205_p4 }
   0xd   :  { %p208_p7 = pnand %p207_p6, %p201_p3 }
   0xf   :  { %211 = shalt.err (!%p208_p7)
}
  0x10   :  { %20 = dma.hbm_to_vmem [thread:$0]  %s311_s1, 256, %s18_s10, [#allocation3]  }
  0x11   :  { %234 = dma.done.wait [#allocation3], 256  }
  0x12   :  { %235 = vsyncadd [#allocation3], 4294967040  ;;  %v239_v0 = vmov 0   ;;  %v32_v1 = vld [vmem:[%s310_s0] sm:$0x3]  ;;  %v31_v4 = vld [vmem:[#allocation2 + $0x8] sm:$0xff]  ;;  %v33_v6 = vlaneseq }
  0x13   :  { %189 = vset.pattern.permute.xlu0 %v239_v0  ;;  %v30_v2 = vld [vmem:[#allocation2] sm:$0xff]  ;;  %v70_v7 = vmax.f32 %v31_v4, 1e-05  ;;  %v240_v8 = vmov 1983009808   ;;  %vm130_vm4 = vcmask 1041408  }
  0x14   :  { %49 = vperm.xlu0 %189, %v32_v1   ;;  %v69_v3 = vmax.f32 %v30_v2, 1e-05  ;;  %v81_v9 = vunpack.c.l.s4 %v240_v8  ;;  %v43_v11 = vshrl.u32 %v33_v6, 7  ;;  %v34_v17 = vand.u32 127, %v33_v6  ;;  %s242_s1 = smov [#allocation5]  }
  0x15   :  { %v72_v12 = vmin.f32 %v70_v7, 0.99999  ;;  %v241_v61 = vmov 0.0   ;;  %s171_s23 = sshll.u32 %s242_s1, 4  ;;  %s172_s23 = int_to_ptr.vmem [resolvable:$true] %s171_s23 }
  0x16   :  { %v71_v5 = vmin.f32 %v69_v3, 0.99999  ;;  %v82_v13 = vunpack.c.0.s8 %v81_v9  ;;  %v35_v21 = vadd.s32 128, %v34_v17  ;;  %v36_v22 = vadd.s32 256, %v34_v17  ;;  %s212_s24 = scalar_lea.vmem %s172_s23, 16  ;;  %s216_s25 = scalar_lea.vmem %s172_s23, 32 }
  0x17   :  { %v181_v15 = vadd.f32 -1.0, %v72_v12  ;;  %v37_v23 = vadd.s32 384, %v34_v17  ;;  %v38_v25 = vadd.s32 512, %v34_v17  ;;  %vm47_vm0 = vcmp.lt.s32.totalorder %v43_v11, 2  ;;  %p213_p8 = scmp.ne.s32.totalorder %s172_s23, %s212_s24  ;;  %p217_p9 = scmp.lt.s32.totalorder %s172_s23, %s172_s23 }
  0x18   :  { %v180_v10 = vadd.f32 -1.0, %v71_v5  ;;  %v85_v16 = vsub.s32 %v82_v13, %v43_v11  ;;  %v39_v27 = vadd.s32 640, %v34_v17  ;;  %v40_v30 = vadd.s32 768, %v34_v17  ;;  %p218_p10 = scmp.lt.s32.totalorder %s216_s25, %s212_s24 }
  0x19   :  { %v76_v19 = vmul.f32 %v181_v15, %v181_v15  ;;  %v41_v34 = vadd.s32 896, %v34_v17 }
  0x1a   :  { %v75_v14 = vmul.f32 %v180_v10, %v180_v10  ;;  %p219_p11 = por %p218_p10, %p217_p9 }
  0x1b   :  { %v96_v29 = vcombine.high %v76_v19, %v76_v19  ;;  %v103_v32 = vrot.slane %v76_v19, %v85_v16 }
  0x1c   :  { %v79_v18 = vcombine.high %v75_v14, %v75_v14  ;;  %v86_v20 = vrot.slane %v75_v14, %v85_v16  ;;  %p220_p12 = pnand %p219_p11, %p213_p8 }
  0x1d   :  { %v110_v37 = vrot.slane %v96_v29, %v85_v16  ;;  %v111_v41 = vcombine.high %v103_v32, %v103_v32 }
  0x1e   :  { %v93_v24 = vrot.slane %v79_v18, %v85_v16  ;;  %v94_v28 = vcombine.high %v86_v20, %v86_v20 }
  0x1f   :  { %v112_v48 = vcombine.high %v110_v37, %v110_v37 }
  0x20   :  { %v95_v31 = vcombine.high %v93_v24, %v93_v24 }
  0x93   :  { %v50_v26 = vpop.permute.xlu0 %49 }
  0x94   :  { %vm51_vm1 = vcmp.eq.s32.totalorder %v34_v17, %v50_v26  ;;  %vm52_vm2 = vcmp.eq.s32.totalorder %v35_v21, %v50_v26  ;;  %vm53_vm3 = vcmp.eq.s32.totalorder %v36_v22, %v50_v26  ;;  %vm54_vm5 = vcmp.eq.s32.totalorder %v37_v23, %v50_v26 }
  0x95   :  { %vm61_vm6 = vmand %vm51_vm1, %vm47_vm0  ;;  %vm55_vm7 = vcmp.eq.s32.totalorder %v38_v25, %v50_v26  ;;  %vm56_vm9 = vcmp.eq.s32.totalorder %v39_v27, %v50_v26  ;;  %vm57_vm12 = vcmp.eq.s32.totalorder %v40_v30, %v50_v26  ;;  %vm58_vm15 = vcmp.eq.s32.totalorder %v41_v34, %v50_v26 }
  0x96   :  { %vm62_vm8 = vmand %vm52_vm2, %vm47_vm0  ;;  %v121_v33 = vsel %vm61_vm6, %v86_v20, 0.0 }
  0x97   :  { %vm63_vm10 = vmand %vm53_vm3, %vm47_vm0  ;;  %v122_v35 = vsel %vm62_vm8, %v94_v28, 0.0  ;;  %v131_v36 = vsel %vm130_vm4, %v121_v33, 0.0  ;;  %vm28_vm3 = vcmask 0  }
  0x98   :  { %vm64_vm11 = vmand %vm54_vm5, %vm47_vm0  ;;  %v123_v38 = vsel %vm63_vm10, %v93_v24, 0.0  ;;  %v132_v39 = vsel %vm130_vm4, %v122_v35, 0.0  ;;  %29 = vst.msk [vmem:[#allocation5] sm:$0x1] %vm28_vm3, %v241_v61 }
  0x99   :  { %vm280_vm13 = vmand %vm55_vm7, %vm47_vm0  ;;  %v124_v42 = vsel %vm64_vm11, %v95_v31, 0.0  ;;  %v133_v43 = vadd.f32 %v132_v39, %v131_v36  ;;  %v134_v44 = vsel %vm130_vm4, %v123_v38, 0.0 }
  0x9a   :  { %vm66_vm14 = vmand %vm56_vm9, %vm47_vm0  ;;  %v125_v45 = vsel %vm280_vm13, %v103_v32, 0.0  ;;  %v136_v47 = vsel %vm130_vm4, %v124_v42, 0.0 }
  0x9b   :  { %v135_v46 = vadd.f32 %v134_v44, %v133_v43  ;;  %vm67_vm1 = vmand %vm57_vm12, %vm47_vm0  ;;  %v126_v49 = vsel %vm66_vm14, %v111_v41, 0.0  ;;  %v138_v51 = vsel %vm130_vm4, %v125_v45, 0.0 }
  0x9c   :  { %vm68_vm2 = vmand %vm58_vm15, %vm47_vm0  ;;  %v127_v52 = vsel %vm67_vm1, %v110_v37, 0.0  ;;  %v140_v54 = vsel %vm130_vm4, %v126_v49, 0.0 }
  0x9d   :  { %v137_v50 = vadd.f32 %v136_v47, %v135_v46  ;;  %v128_v55 = vsel %vm68_vm2, %v112_v48, 0.0  ;;  %v142_v57 = vsel %vm130_vm4, %v127_v52, 0.0 }
  0x9e   :  { %v144_v59 = vsel %vm130_vm4, %v128_v55, 0.0 }
  0x9f   :  { %v139_v53 = vadd.f32 %v138_v51, %v137_v50  ;;  %v129_v5 = vld [vmem:[#allocation5] sm:$0x1] }
  0xa1   :  { %v141_v56 = vadd.f32 %v140_v54, %v139_v53 }
  0xa3   :  { %v143_v58 = vadd.f32 %v142_v57, %v141_v56 }
  0xa5   :  { %v145_v60 = vadd.f32 %v144_v59, %v143_v58 }
  0xa7   :  { %146 = vadd.xlane.f32.xlu0 %v145_v60 }
 0x134   :  { %v147_v62 = vpop.xlane.xlu0 %146 }
 0x135   :  { %v148_v63 = vrot.slane %v147_v62, 4 }
 0x137   :  { %v149_v0 = vadd.f32 %v148_v63, %v147_v62 }
 0x139   :  { %v150_v1 = vrot.slane %v149_v0, 2 }
 0x13b   :  { %v151_v2 = vadd.f32 %v150_v1, %v149_v0 }
 0x13d   :  { %v152_v3 = vrot.slane %v151_v2, 1 }
 0x13f   :  { %v153_v4 = vadd.f32 %v152_v3, %v151_v2 }
 0x141   :  { %182 = vpush %v153_v4 }
 0x172   :  { %s183_s0 = spop %182 }
 0x173   :  { %v155_v6 = vstv %s183_s0 }
 0x174   :  { %v156_v7 = vadd.f32 %v155_v6, %v129_v5 }
 0x176   :  { %158 = vst.msk [vmem:[#allocation5] sm:$0x1] %vm28_vm3, %v156_v7 }
 0x17d   :  { %v162_v8 = vld [vmem:[#allocation5] sm:$0x1] }
 0x17e   :  { %v163_v9 = vmul.f32 0.5, %v162_v8 }
 0x180   :  { %164 = vst.msk [vmem:[#allocation5] sm:$0x1] %vm28_vm3, %v163_v9 }
 0x181   :  { %223 = shalt.err (!%p220_p12)
}
 0x182   :  { %s224_s28 = scalar_lea.hbm %s312_s2, 16 }
 0x183   :  { %p225_p13 = scmp.ne.s32.totalorder %s312_s2, %s224_s28  ;;  %p228_p0 = scmp.lt.u32.totalorder %s224_s28, %s312_s2 }
 0x185   :  { %p230_p1 = pnand %p228_p0, %p225_p13 }
 0x187   :  { %233 = shalt.err (!%p230_p1)
}
 0x188   :  { %174 = dma.vmem_to_hbm [thread:$0]  %s172_s23, 16, %s312_s2, [#allocation4]  }
 0x189   :  { %236 = dma.done.wait [#allocation4], 16  }
 0x18a   :  { %237 = vsyncadd [#allocation4], 4294967280 }
 0x18b   :  { %178 = vsyncpa [#allocation3], 1 }
 0x18c   :  { %179 = vsyncpa [#allocation4], 1 }

</bundles_post_ra>
